<compile_context>
chip_gen: v5e
topology: v5e:2x2
jax: 0.10.0
libtpu: 0.0.40
codegen_flags: <defaults>
</compile_context>

<pallas_src>
import functools
import math

import jax
import jax.numpy as jnp
from jax.experimental import pallas as pl
from jax.experimental.pallas import tpu as pltpu


def _round_up(x, m):
    return ((x + m - 1) // m) * m


def _gather_kernel(ids_ref, w_hbm, out_ref, row_buf, sem, *, scale, tok_tile):
    """Gather `tok_tile` embedding rows from HBM, scale, store one out block.

    ids_ref: (n_tok_pad,) int32 token ids in SMEM (scalar-prefetched).
    w_hbm:   (vocab, d_model) embedding table left in HBM (pl.ANY).
    out_ref: (tok_tile, d_model) output block in VMEM.
    row_buf: (tok_tile, d_model) VMEM gather buffer.
    sem:     scalar DMA semaphore (accumulates bytes of all row copies).
    """
    base = pl.program_id(0) * tok_tile

    # Issue every row DMA for this tile up front so they are all in flight
    # together (amortizes descriptor-issue latency).
    def _start(t, carry):
        tok = ids_ref[base + t]
        pltpu.make_async_copy(w_hbm.at[tok], row_buf.at[t], sem).start()
        return carry

    jax.lax.fori_loop(0, tok_tile, _start, None)

    # Wait for each row copy; the wait descriptor only needs matching sizes,
    # so a static source index is fine.
    def _wait(t, carry):
        pltpu.make_async_copy(w_hbm.at[0], row_buf.at[t], sem).wait()
        return carry

    jax.lax.fori_loop(0, tok_tile, _wait, None)

    out_ref[...] = (row_buf[...].astype(jnp.float32) * scale).astype(out_ref.dtype)


def embeddings_forward(x, weight, scale_embedding=True, tok_tile=256):
    """Pallas implementation of Embeddings.forward.

    x:      (batch, seq) integer token indices
    weight: (vocab, d_model) float embedding table
    returns (batch, seq, d_model) in weight.dtype
    """
    batch, seq = x.shape
    vocab, d_model = weight.shape
    n_tok = batch * seq
    scale = float(math.sqrt(d_model)) if scale_embedding else 1.0

    out_dtype = weight.dtype
    itemsize = jnp.dtype(out_dtype).itemsize

    # Sublane-dense token tile; keep at least 2 grid steps so the "parallel"
    # grid axis can actually be sharded across v7x's two TensorCores.
    half = _round_up(max(1, -(-n_tok // 2)), 8)
    tok_tile = max(8, min(tok_tile, half))
    n_tok_pad = _round_up(n_tok, tok_tile)
    n_tiles = n_tok_pad // tok_tile

    # Clamp ids (guards the data-dependent HBM DMA) and pad the token axis
    # with id 0 (padded rows are sliced away after the call).
    idx = jnp.clip(x.reshape(n_tok).astype(jnp.int32), 0, vocab - 1)
    if n_tok_pad != n_tok:
        idx = jnp.pad(idx, (0, n_tok_pad - n_tok))

    # Honest VMEM budget: gather buffer + double-buffered output tile + slack,
    # clamped to ~80% of this chip's physical VMEM (64 MiB on v7x).
    vmem_bytes = (
        tok_tile * d_model * itemsize        # row gather buffer
        + 2 * tok_tile * d_model * itemsize  # double-buffered output tile
        + (2 << 20)                          # headroom
    )
    try:
        vmem_cap = int(pltpu.get_tpu_info().vmem_capacity_bytes * 0.8)
    except Exception:  # pragma: no cover - conservative fallback
        vmem_cap = 48 << 20
    vmem_limit = int(min(max(vmem_bytes, 4 << 20), vmem_cap))

    # Memory-bound gather: ~0 FLOPs; bytes = gathered rows + output + ids.
    cost = pl.CostEstimate(
        flops=0,
        transcendentals=0,
        bytes_accessed=2 * n_tok_pad * d_model * itemsize + n_tok_pad * 4,
    )

    out = pl.pallas_call(
        functools.partial(_gather_kernel, scale=scale, tok_tile=tok_tile),
        out_shape=jax.ShapeDtypeStruct((n_tok_pad, d_model), out_dtype),
        grid_spec=pltpu.PrefetchScalarGridSpec(
            num_scalar_prefetch=1,  # token ids land in SMEM before the grid runs
            grid=(n_tiles,),
            in_specs=[
                # Embedding table stays in HBM; rows are DMA'd on demand.
                pl.BlockSpec(memory_space=pl.ANY),
            ],
            out_specs=pl.BlockSpec((tok_tile, d_model), lambda i, ids: (i, 0)),
            scratch_shapes=[
                pltpu.VMEM((tok_tile, d_model), out_dtype),
                pltpu.SemaphoreType.DMA(()),
            ],
        ),
        compiler_params=pltpu.CompilerParams(
            dimension_semantics=("parallel",),
            vmem_limit_bytes=vmem_limit,
        ),
        cost_estimate=cost,
    )(idx, weight)

    if n_tok_pad != n_tok:
        out = out[:n_tok]
    return out.reshape(batch, seq, d_model)


def make_embedding_weight(key, vocab, d_model, padding_idx=None, dtype=jnp.float32):
    """Deterministic init matching nn.init.normal_(std=d_model**-0.5)."""
    w = jax.random.normal(key, (vocab, d_model), dtype=jnp.float32) * (d_model ** -0.5)
    if padding_idx is not None:
        w = w.at[padding_idx].set(0.0)
    return w.astype(dtype)


if __name__ == "__main__":
    # Small shapes consistent with the module's forward.
    batch, seq = 2, 8
    vocab, d_model = 64, 32
    padding_idx = 0

    key = jax.random.PRNGKey(0)
    k_w, k_x = jax.random.split(key)

    weight = make_embedding_weight(k_w, vocab, d_model, padding_idx)
    x = jax.random.randint(k_x, (batch, seq), 0, vocab, dtype=jnp.int32)
    # Ensure the padding index appears at least once.
    x = x.at[0, 0].set(padding_idx)

    out = embeddings_forward(x, weight, scale_embedding=True)
    out = jax.block_until_ready(out)

    # Reference check in plain JAX (same semantics as the PyTorch module).
    ref = weight[x] * math.sqrt(d_model)
    assert out.shape == (batch, seq, d_model)
    assert jnp.allclose(out, ref, atol=1e-6, rtol=1e-6), "mismatch vs reference"
    assert jnp.all(out[0, 0] == 0.0), "padding_idx row should be zero"

    print("KERNEL_OK")
</pallas_src>

<mosaic_0001>
module attributes {stable_mosaic.version = 11 : i64} {
  func.func @_gather_kernel(%arg0: i32, %arg1: memref<16xi32, #tpu.memory_space<smem>>, %arg2: memref<64x32xf32, #tpu.memory_space<any>>, %arg3: memref<8x32xf32, #tpu.memory_space<vmem>>, %arg4: memref<8x32xf32, #tpu.memory_space<vmem>>, %arg5: memref<!tpu.dma_semaphore, #tpu.memory_space<semaphore_mem>>) attributes {dimension_semantics = [#tpu.dimension_semantics<parallel>], iteration_bounds = array<i64: 2>, scalar_prefetch = 1 : i64, scratch_operands = 2 : i64, tpu.core_type = #tpu.core_type<tc>, window_params = [{}, {transform_indices = @transform_1, window_bounds = array<i64: 8, 32>}]} {
    %c8_i32 = arith.constant 8 : i32
    %0 = arith.muli %arg0, %c8_i32 : i32
    %c0_i32 = arith.constant 0 : i32
    %c8_i32_0 = arith.constant 8 : i32
    %1 = arith.addi %c0_i32, %c8_i32_0 : i32
    %c1_i32 = arith.constant 1 : i32
    scf.for %arg6 = %c0_i32 to %1 step %c1_i32  : i32 {
      %7 = arith.addi %0, %arg6 : i32
      %8 = arith.index_cast %7 : i32 to index
      %9 = memref.load %arg1[%8] : memref<16xi32, #tpu.memory_space<smem>>
      %c0_i32_9 = arith.constant 0 : i32
      %10 = tpu.memref_slice %arg2[%9, %c0_i32_9] : memref<64x32xf32, #tpu.memory_space<any>> -> memref<1x32xf32, #tpu.memory_space<any>>
      %11 = tpu.memref_squeeze %10 : memref<1x32xf32, #tpu.memory_space<any>> -> memref<32xf32, #tpu.memory_space<any>>
      %c0_i32_10 = arith.constant 0 : i32
      %12 = tpu.memref_slice %arg4[%arg6, %c0_i32_10] : memref<8x32xf32, #tpu.memory_space<vmem>> -> memref<1x32xf32, #tpu.memory_space<vmem>>
      %13 = tpu.memref_squeeze %12 : memref<1x32xf32, #tpu.memory_space<vmem>> -> memref<32xf32, #tpu.memory_space<vmem>>
      tpu.enqueue_dma source(%11 : memref<32xf32, #tpu.memory_space<any>>) target(%13 : memref<32xf32, #tpu.memory_space<vmem>>) target_semaphore(%arg5 : memref<!tpu.dma_semaphore, #tpu.memory_space<semaphore_mem>>)
    }
    %c8_i32_1 = arith.constant 8 : i32
    %c0_i32_2 = arith.constant 0 : i32
    %c8_i32_3 = arith.constant 8 : i32
    %2 = arith.addi %c0_i32_2, %c8_i32_3 : i32
    %c1_i32_4 = arith.constant 1 : i32
    scf.for %arg6 = %c0_i32_2 to %2 step %c1_i32_4  : i32 {
      %c0_i32_9 = arith.constant 0 : i32
      %c0_i32_10 = arith.constant 0 : i32
      %7 = tpu.memref_slice %arg2[%c0_i32_9, %c0_i32_10] : memref<64x32xf32, #tpu.memory_space<any>> -> memref<1x32xf32, #tpu.memory_space<any>>
      %8 = tpu.memref_squeeze %7 : memref<1x32xf32, #tpu.memory_space<any>> -> memref<32xf32, #tpu.memory_space<any>>
      %c0_i32_11 = arith.constant 0 : i32
      %9 = tpu.memref_slice %arg4[%arg6, %c0_i32_11] : memref<8x32xf32, #tpu.memory_space<vmem>> -> memref<1x32xf32, #tpu.memory_space<vmem>>
      %10 = tpu.memref_squeeze %9 : memref<1x32xf32, #tpu.memory_space<vmem>> -> memref<32xf32, #tpu.memory_space<vmem>>
      tpu.wait_dma2 semaphore(%arg5 : memref<!tpu.dma_semaphore, #tpu.memory_space<semaphore_mem>>) src(%8 : memref<32xf32, #tpu.memory_space<any>>) dst(%10 : memref<32xf32, #tpu.memory_space<vmem>>)
    }
    %c8_i32_5 = arith.constant 8 : i32
    %c0 = arith.constant 0 : index
    %c0_6 = arith.constant 0 : index
    %3 = vector.load %arg4[%c0, %c0_6] : memref<8x32xf32, #tpu.memory_space<vmem>>, vector<8x32xf32>
    %cst = arith.constant 5.65685415 : f32
    %4 = vector.broadcast %cst : f32 to vector<8x32xf32>
    %5 = arith.mulf %3, %4 : vector<8x32xf32>
    %c0_7 = arith.constant 0 : index
    %c0_8 = arith.constant 0 : index
    %6 = vector.load %arg3[%c0_7, %c0_8] : memref<8x32xf32, #tpu.memory_space<vmem>>, vector<8x32xf32>
    tpu.vector_store %arg3[%c0_7, %c0_8], %5 {strides = array<i32>} : memref<8x32xf32, #tpu.memory_space<vmem>>, vector<8x32xf32>,
    return
  }
  func.func @transform_1(%arg0: i32, %arg1: memref<16xi32, #tpu.memory_space<smem>>) -> (i32, i32) {
    %c0_i32 = arith.constant 0 : i32
    %c0_i32_0 = arith.constant 0 : i32
    return %arg0, %c0_i32 : i32, i32
  }
}

</mosaic_0001>

<bundles_post_ra>
// kernel: tpu_custom_call.1
= control target key start
LH: loop header
LB: loop body
LE: loop exit
PB: predicated region body
PF: predicated region fallthrough
CT: control target
= control target key end

     0   :  { %s340_s12 = smov [#allocation5]   ;;  %s443_s0 = inlined_call_operand.vmem [shape: s32[16], index: 0, kind: input, shape index: {}]   ;;  %s444_s1 = inlined_call_operand.vmem [shape: f32[64,32], index: 1, kind: input, shape index: {}]   ;;  %s445_s2 = inlined_call_operand.hbm [shape: f32[16,32], index: 2, kind: output, shape index: {}]  }
   0x1   :  { %s8_s11 = sshll.u32 %s443_s0, 4  ;;  %s9_s11 = int_to_ptr.vmem [resolvable:$true] %s8_s11 }
   0x2   :  { %11 = dma.vmem_to_smem %s9_s11, 16, %s340_s12, [#allocation4] }
   0x3   :  { %312 = dma.done.wait [#allocation4], 16 }
   0x4   :  { %313 = vsyncadd [#allocation4], 4294967280 }
   0x5   :  { %14 = sfence }
   0x6   :  { %15 = vsyncpa [#allocation7], 0 }
   0x7   :  { %17 = vsyncpa [#allocation7 + $0x1], 0  ;;  %s359_s13 = smov 0   ;;  %s361_s14 = smov 0  }
   0x8   :  { %s363_s15 = smov 0  }
   0x9 LB: > { %s194_s0 = sadd.s32 4294967295, %s330_s15   ;;  %s376_s16 = sadd.s32 1, %s330_s15   ;;  %s330_s15 = sphi %s363_s15, %s450_s15   ;;  %s326_s14 = sphi %s361_s14, %s449_s14   ;;  %s322_s13 = sphi %s359_s13, %s448_s13  }
   0xa   : > { %s26_s17 = ssub.s32 %s330_s15, %s376_s16  ;;  %s29_s18 = sadd.s32 1, %s326_s14 }
   0xb   : > { %p27_p0 = scmp.eq.s32.totalorder %s26_s17, 0  ;;  %p195_p1 = scmp.ne.s32.totalorder %s26_s17, 0 }
   0xc   : > { %p33_p2 = scmp.eq.s32.totalorder %s330_s15, 1  ;;  %p38_p3 = scmp.ne.s32.totalorder %s326_s14, %s322_s13 }
   0xd   : > { %s385_s19 = scalar_select %p27_p0, %s326_s14, %s29_s18  }
   0xe   : > { %p387_p4 = por %p195_p1, %p33_p2  ;;  %p39_p5 = scmp.eq.s32.totalorder %s194_s0, 1 }
   0xf   : > { %p196_p7 = scmp.ge.s32.totalorder %s330_s15, 2 }
  0x10   : > { %p391_p6 = por %p39_p5, %p38_p3  ;;  %s53_s22 = sand.u32 (!%p196_p7), 1, %s326_s14  }
  0x11   : > { %48 = sbr.rel (%p196_p7) target bundleno = 57 (0x39), region = 12  ;;  %s198_s23 = sshll.u32 (!%p196_p7), %s330_s15, 3 }
  0x12   : > { %s400_s24 = sshll.u32 (!%p196_p7), %s53_s22, 3  ;;  %s332_s26 = smov (!%p196_p7), 0  }
  0x13   : > { %s55_s25 = scalar_lea.vmem (!%p196_p7), [#allocation6], %s400_s24 }
  0x16 LB: >> { %s63_s27 = sadd.s32 %s334_s26, %s198_s23  ;;  %s66_s4 = scalar_lea.vmem [#allocation2], %s334_s26  ;;  %s334_s26 = sphi %s332_s26, %s62_s26  }
  0x17   : >> { %s64_s28 = sld [smem:[#allocation5 + %s63_s27]] }
  0x1d   : >> { %s65_s3 = scalar_lea.vmem %s444_s1, %s64_s28 }
  0x1e   : >> { %v81_v0 = vld [vmem:[%s65_s3] sm:$0x1] }
  0x1f   : >> { %82 = vst [vmem:[%s66_s4] sm:$0x1] %v81_v0 }
  0x20   : >> { %100 = vsyncadd [#allocation3], 16  ;;  %s62_s26 = sadd.s32 1, %s334_s26  }
  0x21   : >> { %p59_p8 = scmp.ge.s32.totalorder %s62_s26, 8  }
  0x22   : > { %s336_s5 = smov (%p59_p8), 0  }
  0x23   : > { %61 = sbr.rel (!%p59_p8) target bundleno = 22 (0x16), region = 94 }
  0x28 LB: >> { %314 = dma.done.wait [#allocation3], 16  ;;  %s338_s5 = sphi %s336_s5, %s106_s5  }
  0x29   : >> { %315 = vsyncadd [#allocation3], 4294967280  ;;  %s106_s5 = sadd.s32 1, %s338_s5  }
  0x2a   : >> { %p103_p9 = scmp.ge.s32.totalorder %s106_s5, 8  }
  0x2b   : > { %v109_v1 = vld [vmem:[#allocation2] sm:$0xff] (%p103_p9)  ;;  %vm111_vm0 = vcmask (%p103_p9), 261120   ;;  %s124_s8 = scalar_lea.hbm (%p103_p9), %s445_s2, %s198_s23  ;;  %s126_s9 = sshll.u32 (%p103_p9), %s55_s25, 4  ;;  %s127_s9 = int_to_ptr.vmem [resolvable:$true] %s126_s9 }
  0x2c   : > { %105 = sbr.rel (!%p103_p9) target bundleno = 40 (0x28), region = 105  ;;  %v110_v2 = vmul.f32 (%p103_p9), 5.656854, %v109_v1  ;;  %s128_s10 = sshll.u32 (%p103_p9), %s124_s8, 4  ;;  %s129_s10 = int_to_ptr.hbm [resolvable:$true] %s128_s10 }
  0x2d   : > { %s114_s11 = scalar_lea.sflag (%p103_p9), [#allocation7], %s53_s22  ;;  %s278_s12 = sshra.s32 (%p103_p9), %s129_s10, 4  ;;  %s279_s12 = int_to_ptr.hbm [resolvable:$true] %s278_s12 }
  0x2e   : > { %112 = vst.msk [vmem:[%s55_s25] sm:$0xff] (%p103_p9), %vm111_vm0, %v110_v2  ;;  %s280_s0 = scalar_lea.hbm (%p103_p9), %s279_s12, 8  ;;  %s284_s23 = scalar_lea.hbm (%p103_p9), %s445_s2, 16 }
  0x2f   : > { %p281_p10 = scmp.ne.s32.totalorder (%p103_p9), %s279_s12, %s280_s0  ;;  %p285_p13 = scmp.lt.s32.totalorder (%p103_p9), %s279_s12, %s445_s2 }
  0x30   : > { %p286_p0 = scmp.lt.s32.totalorder (%p103_p9), %s284_s23, %s280_s0 }
  0x31   : > { %p282_p11 = pnand %p281_p10, %p387_p4 }
  0x32   : > { %p287_p1 = por %p286_p0, %p285_p13 }
  0x33   : > { %p283_p12 = pneg %p282_p11 }
  0x35   : > { %p288_p2 = pnand %p287_p1, %p283_p12 }
  0x37   : > { %291 = shalt.err (!%p288_p2)
}
  0x38   : > { %204 = dma.vmem_to_hbm [thread:$0]  (%p387_p4), %s127_s9, 128, %s129_s10, %s114_s11  }
  0x39 PF: > { %p210_p3 = scmp.ge.s32.totalorder %s330_s15, 1  ;;  %s140_s22 = sand.u32 1, %s322_s13  }
  0x3a   : > { %s141_s24 = scalar_lea.sflag [#allocation7], %s140_s22 }
  0x3b   : > { %p207_p5 = pnand %p210_p3, %p391_p6 }
  0x3d   : > { %p208_p7 = pneg %p207_p5 }
  0x3f   : > { %317 = dma.done.wait (%p208_p7), %s141_s24, 128  }
  0x40   : > { %319 = vsyncadd (%p208_p7), %s141_s24, 4294967168  ;;  %p20_p8 = scmp.ge.s32.totalorder %s376_s16, 3   ;;  %s448_s13 = smov %s326_s14 }
  0x41   : > { %s449_s14 = smov %s385_s19  ;;  %s450_s15 = smov %s376_s16 }
  0x42   :  { %22 = sbr.rel (!%p20_p8) target bundleno = 9 (0x9), region = 116 }
  0x47   :  { %147 = vsyncpa [#allocation7], 1 }
  0x48   :  { %149 = vsyncpa [#allocation7 + $0x1], 1 }
  0x49   :  { %150 = vsyncmov [#allocation3] }
  0x4c   :  { %s151_s15 = vpop.sfrf %150 }
  0x4d   :  { %p203_p4 = scmp.ne.s32.totalorder %s151_s15, 0 }
  0x4f   :  { %155 = shalt.err (%p203_p4)  }

</bundles_post_ra>
